<compile_context>
chip_gen: v7x
topology: tpu7x:2x2x1
jax: 0.10.0
libtpu: 0.0.40
codegen_flags: <defaults>
</compile_context>

<pallas_src>
import functools

import jax
import jax.numpy as jnp
from jax.experimental import pallas as pl
from jax.experimental.pallas import tpu as pltpu


def _round_up(x, m):
    return ((x + m - 1) // m) * m


def _actor_kernel(obs_ref, w1_ref, b1_ref, w2_ref, b2_ref, w3_ref, b3_ref,
                  out_ref, *, hidden_activation, max_action):
    """One batch tile: 3 MXU matmuls (f32 accumulate), f32 activations."""
    mm_dtype = w1_ref.dtype  # matmul input dtype (f32 or bf16)

    if hidden_activation == "tanh":
        act = jnp.tanh
    else:  # "relu" (default for this actor)
        act = lambda v: jnp.maximum(v, 0.0)

    # Layer 1: Linear + activation
    h = jnp.dot(obs_ref[...], w1_ref[...], preferred_element_type=jnp.float32)
    h = act(h + b1_ref[...])                       # f32 elementwise (v5e-safe)
    # Layer 2: Linear + activation
    h = jnp.dot(h.astype(mm_dtype), w2_ref[...], preferred_element_type=jnp.float32)
    h = act(h + b2_ref[...])
    # Layer 3: Linear + Tanh output activation, scaled by max_action
    o = jnp.dot(h.astype(mm_dtype), w3_ref[...], preferred_element_type=jnp.float32)
    o = jnp.tanh(o + b3_ref[...])
    out_ref[...] = (max_action * o).astype(out_ref.dtype)


def _reference_forward(obs, params, max_action, *, activation="relu"):
    """Pure-JAX reference (also used as the tiny-batch fallback)."""
    act = jnp.tanh if activation == "tanh" else jax.nn.relu
    h = act(obs @ params["w1"] + params["b1"])
    h = act(h @ params["w2"] + params["b2"])
    return max_action * jnp.tanh(h @ params["w3"] + params["b3"])


def mlp_det_actor_forward(obs, params, max_action, *, activation="relu",
                          matmul_dtype=jnp.float32, block_batch=1024,
                          min_pallas_batch=256):
    """obs: (B, obs_dim) f32. params: dict w1,b1,w2,b2,w3,b3 (weights (in,out),
    biases (1,out)). Returns (B, act_dim) f32 = max_action * tanh(MLP(obs))."""
    B, obs_dim = obs.shape
    act_dim = params["w3"].shape[1]

    # Per-review: at tiny batches the launch/per-step overhead and MXU padding
    # dominate -> fused XLA wins. (Demo forces the kernel with min_pallas_batch=0.)
    if B < min_pallas_batch:
        return _reference_forward(obs, params, max_action, activation=activation)

    # Matmul operands (obs + weights) in matmul_dtype; biases stay f32.
    # Casting obs in the wrapper halves its HBM stream when bf16 is used.
    w1 = params["w1"].astype(matmul_dtype)
    w2 = params["w2"].astype(matmul_dtype)
    w3 = params["w3"].astype(matmul_dtype)
    b1 = params["b1"].astype(jnp.float32)
    b2 = params["b2"].astype(jnp.float32)
    b3 = params["b3"].astype(jnp.float32)
    obs_c = obs.astype(matmul_dtype)

    # Row tile: multiple of 8 (f32) / 16 (bf16) sublanes, capped at block_batch.
    sub = 8 if jnp.dtype(matmul_dtype).itemsize == 4 else 16
    tile_b = _round_up(min(block_batch, _round_up(B, sub)), sub)
    b_pad = _round_up(B, tile_b)
    if b_pad != B:
        obs_c = jnp.pad(obs_c, ((0, b_pad - B), (0, 0)))

    grid = (b_pad // tile_b,)
    kernel = functools.partial(_actor_kernel,
                               hidden_activation=activation,
                               max_action=float(max_action))

    row_map = lambda i: (i, 0)       # streamed per batch tile
    const_map = lambda i: (0, 0)     # weights/biases: fetched once, VMEM-resident

    out = pl.pallas_call(
        kernel,
        out_shape=jax.ShapeDtypeStruct((b_pad, act_dim), jnp.float32),
        grid=grid,
        in_specs=[
            pl.BlockSpec((tile_b, obs_dim), row_map),
            pl.BlockSpec(w1.shape, const_map),
            pl.BlockSpec(b1.shape, const_map),
            pl.BlockSpec(w2.shape, const_map),
            pl.BlockSpec(b2.shape, const_map),
            pl.BlockSpec(w3.shape, const_map),
            pl.BlockSpec(b3.shape, const_map),
        ],
        out_specs=pl.BlockSpec((tile_b, act_dim), row_map),
        compiler_params=pltpu.CompilerParams(
            dimension_semantics=("parallel",)),  # megacore sharding on v7x
    )(obs_c, w1, b1, w2, b2, w3, b3)

    return out[:B]


def init_params(key, obs_dim, hidden_sizes, act_dim):
    """Deterministic synthetic init (uniform ±1/sqrt(fan_in), like torch Linear)."""
    sizes = [obs_dim] + list(hidden_sizes) + [act_dim]
    params = {}
    for j in range(len(sizes) - 1):
        fan_in, fan_out = sizes[j], sizes[j + 1]
        key, kw, kb = jax.random.split(key, 3)
        bound = 1.0 / jnp.sqrt(float(fan_in))
        params[f"w{j + 1}"] = jax.random.uniform(
            kw, (fan_in, fan_out), jnp.float32, -bound, bound)
        params[f"b{j + 1}"] = jax.random.uniform(
            kb, (1, fan_out), jnp.float32, -bound, bound)
    return params


if __name__ == "__main__":
    key = jax.random.PRNGKey(0)
    batch, obs_dim, act_dim, hidden_sizes = 2, 16, 4, (32, 32)
    max_action = 2.0

    key, k_obs = jax.random.split(key)
    obs = jax.random.normal(k_obs, (batch, obs_dim), jnp.float32)
    params = init_params(key, obs_dim, hidden_sizes, act_dim)

    # 1) Small-shape check (forces the Pallas kernel, f32 path, tight tolerance).
    a = mlp_det_actor_forward(obs, params, max_action, min_pallas_batch=0)
    jax.block_until_ready(a)
    a_ref = _reference_forward(obs, params, max_action)
    assert a.shape == (batch, act_dim), a.shape
    assert jnp.allclose(a, a_ref, atol=1e-5), float(jnp.max(jnp.abs(a - a_ref)))

    # 2) Larger, non-tile-multiple batch: exercises the pipelined grid, padding,
    #    VMEM-resident weights and bf16 matmul inputs (looser tolerance).
    key, k_big = jax.random.split(key)
    big = 2051
    obs_big = jax.random.normal(k_big, (big, obs_dim), jnp.float32)
    a_big = mlp_det_actor_forward(obs_big, params, max_action,
                                  matmul_dtype=jnp.bfloat16)
    jax.block_until_ready(a_big)
    a_big_ref = _reference_forward(obs_big, params, max_action)
    assert a_big.shape == (big, act_dim), a_big.shape
    assert jnp.allclose(a_big, a_big_ref, atol=5e-2), \
        float(jnp.max(jnp.abs(a_big - a_big_ref)))

    print("KERNEL_OK")
</pallas_src>

<mosaic_0001>
module attributes {stable_mosaic.version = 11 : i64} {
  func.func @_actor_kernel(%arg0: i32, %arg1: memref<8x16xf32, #tpu.memory_space<vmem>>, %arg2: memref<16x32xf32, #tpu.memory_space<vmem>>, %arg3: memref<1x32xf32, #tpu.memory_space<vmem>>, %arg4: memref<32x32xf32, #tpu.memory_space<vmem>>, %arg5: memref<1x32xf32, #tpu.memory_space<vmem>>, %arg6: memref<32x4xf32, #tpu.memory_space<vmem>>, %arg7: memref<1x4xf32, #tpu.memory_space<vmem>>, %arg8: memref<8x4xf32, #tpu.memory_space<vmem>>) attributes {dimension_semantics = [#tpu.dimension_semantics<parallel>], iteration_bounds = array<i64: 1>, scalar_prefetch = 0 : i64, scratch_operands = 0 : i64, tpu.core_type = #tpu.core_type<tc>, window_params = [{transform_indices = @transform_0, window_bounds = array<i64: 8, 16>}, {pipeline_mode = #tpu.pipeline_mode<synchronous>, transform_indices = @transform_1, window_bounds = array<i64: 16, 32>}, {pipeline_mode = #tpu.pipeline_mode<synchronous>, transform_indices = @transform_2, window_bounds = array<i64: 1, 32>}, {pipeline_mode = #tpu.pipeline_mode<synchronous>, transform_indices = @transform_3, window_bounds = array<i64: 32, 32>}, {pipeline_mode = #tpu.pipeline_mode<synchronous>, transform_indices = @transform_4, window_bounds = array<i64: 1, 32>}, {pipeline_mode = #tpu.pipeline_mode<synchronous>, transform_indices = @transform_5, window_bounds = array<i64: 32, 4>}, {pipeline_mode = #tpu.pipeline_mode<synchronous>, transform_indices = @transform_6, window_bounds = array<i64: 1, 4>}, {transform_indices = @transform_7, window_bounds = array<i64: 8, 4>}]} {
    %c0 = arith.constant 0 : index
    %c0_0 = arith.constant 0 : index
    %0 = vector.load %arg1[%c0, %c0_0] : memref<8x16xf32, #tpu.memory_space<vmem>>, vector<8x16xf32>
    %c0_1 = arith.constant 0 : index
    %c0_2 = arith.constant 0 : index
    %1 = vector.load %arg2[%c0_1, %c0_2] : memref<16x32xf32, #tpu.memory_space<vmem>>, vector<16x32xf32>
    %cst = arith.constant dense<0.000000e+00> : vector<8x32xf32>
    %2 = tpu.matmul %0, %1, %cst {dimension_numbers = #tpu.dot_dimension_numbers<[1], [0], [0], [1], [0, 0, 1, 1], [], []>} : vector<8x16xf32>, vector<16x32xf32>, vector<8x32xf32> -> vector<8x32xf32>
    %c0_3 = arith.constant 0 : index
    %c0_4 = arith.constant 0 : index
    %3 = vector.load %arg3[%c0_3, %c0_4] : memref<1x32xf32, #tpu.memory_space<vmem>>, vector<1x32xf32>
    %4 = vector.broadcast %3 : vector<1x32xf32> to vector<8x32xf32>
    %5 = arith.addf %2, %4 : vector<8x32xf32>
    %cst_5 = arith.constant 0.000000e+00 : f32
    %6 = vector.broadcast %cst_5 : f32 to vector<8x32xf32>
    %7 = arith.maximumf %5, %6 : vector<8x32xf32>
    %c0_6 = arith.constant 0 : index
    %c0_7 = arith.constant 0 : index
    %8 = vector.load %arg4[%c0_6, %c0_7] : memref<32x32xf32, #tpu.memory_space<vmem>>, vector<32x32xf32>
    %cst_8 = arith.constant dense<0.000000e+00> : vector<8x32xf32>
    %9 = tpu.matmul %7, %8, %cst_8 {dimension_numbers = #tpu.dot_dimension_numbers<[1], [0], [0], [1], [0, 0, 1, 1], [], []>} : vector<8x32xf32>, vector<32x32xf32>, vector<8x32xf32> -> vector<8x32xf32>
    %c0_9 = arith.constant 0 : index
    %c0_10 = arith.constant 0 : index
    %10 = vector.load %arg5[%c0_9, %c0_10] : memref<1x32xf32, #tpu.memory_space<vmem>>, vector<1x32xf32>
    %11 = vector.broadcast %10 : vector<1x32xf32> to vector<8x32xf32>
    %12 = arith.addf %9, %11 : vector<8x32xf32>
    %cst_11 = arith.constant 0.000000e+00 : f32
    %13 = vector.broadcast %cst_11 : f32 to vector<8x32xf32>
    %14 = arith.maximumf %12, %13 : vector<8x32xf32>
    %c0_12 = arith.constant 0 : index
    %c0_13 = arith.constant 0 : index
    %15 = vector.load %arg6[%c0_12, %c0_13] : memref<32x4xf32, #tpu.memory_space<vmem>>, vector<32x4xf32>
    %cst_14 = arith.constant dense<0.000000e+00> : vector<8x4xf32>
    %16 = tpu.matmul %14, %15, %cst_14 {dimension_numbers = #tpu.dot_dimension_numbers<[1], [0], [0], [1], [0, 0, 1, 1], [], []>} : vector<8x32xf32>, vector<32x4xf32>, vector<8x4xf32> -> vector<8x4xf32>
    %c0_15 = arith.constant 0 : index
    %c0_16 = arith.constant 0 : index
    %17 = vector.load %arg7[%c0_15, %c0_16] : memref<1x4xf32, #tpu.memory_space<vmem>>, vector<1x4xf32>
    %18 = vector.broadcast %17 : vector<1x4xf32> to vector<8x4xf32>
    %19 = arith.addf %16, %18 : vector<8x4xf32>
    %20 = math.tanh %19 : vector<8x4xf32>
    %cst_17 = arith.constant 2.000000e+00 : f32
    %21 = vector.broadcast %cst_17 : f32 to vector<8x4xf32>
    %22 = arith.mulf %21, %20 : vector<8x4xf32>
    %c0_18 = arith.constant 0 : index
    %c0_19 = arith.constant 0 : index
    %23 = vector.load %arg8[%c0_18, %c0_19] : memref<8x4xf32, #tpu.memory_space<vmem>>, vector<8x4xf32>
    tpu.vector_store %arg8[%c0_18, %c0_19], %22 {strides = array<i32>} : memref<8x4xf32, #tpu.memory_space<vmem>>, vector<8x4xf32>,
    return
  }
  func.func @transform_0(%arg0: i32) -> (i32, i32) {
    %c0_i32 = arith.constant 0 : i32
    %c0_i32_0 = arith.constant 0 : i32
    return %arg0, %c0_i32 : i32, i32
  }
  func.func @transform_1(%arg0: i32) -> (i32, i32) {
    %c0_i32 = arith.constant 0 : i32
    %c0_i32_0 = arith.constant 0 : i32
    %c0_i32_1 = arith.constant 0 : i32
    return %c0_i32, %c0_i32_0 : i32, i32
  }
  func.func @transform_2(%arg0: i32) -> (i32, i32) {
    %c0_i32 = arith.constant 0 : i32
    %c0_i32_0 = arith.constant 0 : i32
    %c0_i32_1 = arith.constant 0 : i32
    return %c0_i32, %c0_i32_0 : i32, i32
  }
  func.func @transform_3(%arg0: i32) -> (i32, i32) {
    %c0_i32 = arith.constant 0 : i32
    %c0_i32_0 = arith.constant 0 : i32
    %c0_i32_1 = arith.constant 0 : i32
    return %c0_i32, %c0_i32_0 : i32, i32
  }
  func.func @transform_4(%arg0: i32) -> (i32, i32) {
    %c0_i32 = arith.constant 0 : i32
    %c0_i32_0 = arith.constant 0 : i32
    %c0_i32_1 = arith.constant 0 : i32
    return %c0_i32, %c0_i32_0 : i32, i32
  }
  func.func @transform_5(%arg0: i32) -> (i32, i32) {
    %c0_i32 = arith.constant 0 : i32
    %c0_i32_0 = arith.constant 0 : i32
    %c0_i32_1 = arith.constant 0 : i32
    return %c0_i32, %c0_i32_0 : i32, i32
  }
  func.func @transform_6(%arg0: i32) -> (i32, i32) {
    %c0_i32 = arith.constant 0 : i32
    %c0_i32_0 = arith.constant 0 : i32
    %c0_i32_1 = arith.constant 0 : i32
    return %c0_i32, %c0_i32_0 : i32, i32
  }
  func.func @transform_7(%arg0: i32) -> (i32, i32) {
    %c0_i32 = arith.constant 0 : i32
    %c0_i32_0 = arith.constant 0 : i32
    return %arg0, %c0_i32 : i32, i32
  }
}

</mosaic_0001>

<bundles_post_ra>
// kernel: tpu_custom_call.1
= control target key start
LH: loop header
LB: loop body
LE: loop exit
PB: predicated region body
PF: predicated region fallthrough
CT: control target
= control target key end

     0   :  { %12 = vsyncpa [#allocation3], 0  ;;  %s399_s24 = smov [#allocation2]   ;;  %s499_s0 = inlined_call_operand.vmem [shape: f32[8,16], index: 0, kind: input, shape index: {}]   ;;  %s500_s1 = inlined_call_operand.hbm [shape: f32[16,32], index: 1, kind: input, shape index: {}]   ;;  %s501_s2 = inlined_call_operand.vmem [shape: f32[1,32], index: 2, kind: input, shape index: {}]   ;;  %s502_s3 = inlined_call_operand.vmem [shape: f32[32,32], index: 3, kind: input, shape index: {}]   ;;  %s503_s4 = inlined_call_operand.vmem [shape: f32[1,32], index: 4, kind: input, shape index: {}]   ;;  %s504_s5 = inlined_call_operand.vmem [shape: f32[32,4], index: 5, kind: input, shape index: {}]   ;;  %s505_s6 = inlined_call_operand.vmem [shape: f32[1,4], index: 6, kind: input, shape index: {}]   ;;  %s506_s7 = inlined_call_operand.vmem [shape: f32[8,4], index: 7, kind: output, shape index: {}]  }
   0x1   :  { %s20_s25 = sshll.u32 %s399_s24, 4  ;;  %s375_s28 = scalar_lea.hbm %s500_s1, 256  ;;  %s21_s25 = int_to_ptr.vmem [resolvable:$true] %s20_s25 }
   0x2   :  { %p376_p0 = scmp.ne.s32.totalorder %s500_s1, %s375_s28  ;;  %p379_p1 = scmp.lt.u32.totalorder %s375_s28, %s500_s1 }
   0x4   :  { %p381_p2 = pnand %p379_p1, %p376_p0 }
   0x6   :  { %384 = shalt.err (!%p381_p2)
}
   0x7   :  { %s385_s10 = scalar_lea.vmem %s21_s25, 256  ;;  %p390_p4 = scmp.lt.s32.totalorder %s21_s25, %s21_s25 }
   0x8   :  { %p386_p3 = scmp.ne.s32.totalorder %s21_s25, %s385_s10  ;;  %p391_p5 = scmp.lt.s32.totalorder %s385_s10, %s385_s10 }
   0xa   :  { %p392_p6 = por %p391_p5, %p390_p4 }
   0xc   :  { %p393_p7 = pnand %p392_p6, %p386_p3 }
   0xe   :  { %396 = shalt.err (!%p393_p7)
}
   0xf   :  { %s400_s11 = smov 128   ;;  %s401_s12 = smov 8  }
  0x10   :  { %26 = dma.hbm_to_vmem [thread:$0]  %s500_s1, 256, %s21_s25, [#allocation3], %s400_s11, %s400_s11, %s401_s12  }
  0x11   :  { %397 = dma.done.wait [#allocation3], 256  }
  0x12   :  { %398 = vsyncadd [#allocation3], 4294967040  ;;  %v402_v0 = vmov 0.0|0.0   ;;  %vm403_vm0 = vmmov 0   ;;  %v404_v1 = vmov 0.0   ;;  %v41_v2 = vld [vmem:[#allocation2] sm:$0xff] }
  0x13   :  { %352 = vmatprep.subr.bf16.mxu0 %v402_v0  ;;  %327 = vmatprep.mubr.msk.f32.mxu0 %vm403_vm0, %v404_v1  ;;  %v42_v3 = vld [vmem:[#allocation2 + $0x8] sm:$0xff]  ;;  %v125_v5 = vld [vmem:[%s502_s3] sm:$0xff]  ;;  %vm50_vm1 = vcmask 130048   ;;  %v127_v9 = vld [vmem:[%s502_s3 + $0x10] sm:$0xff]  ;;  %vm136_vm2 = vcmask 261120   ;;  %vm297_vm3 = vcmask 31744  }
  0x14   :  { %355 = vmatprep.subr.bf16.mxu1 %v402_v0  ;;  %338 = vmatprep.mubr.msk.f32.mxu1 %vm403_vm0, %v404_v1  ;;  %v353_v4 = vpack.c.bf16 %v42_v3, %v41_v2  ;;  %v126_v6 = vld [vmem:[%s502_s3 + $0x8] sm:$0xff]  ;;  %v40_v8 = vld [vmem:[%s499_s0] sm:$0xff]  ;;  %v128_v10 = vld [vmem:[%s502_s3 + $0x18] sm:$0xff] }
  0x15   :  { %v356_v7 = vpack.c.bf16 %v126_v6, %v125_v5  ;;  %v359_v11 = vpack.c.bf16 %v128_v10, %v127_v9  ;;  %v211_v12 = vld [vmem:[%s504_s5] sm:$0xff]  ;;  %v212_v13 = vld [vmem:[%s504_s5 + $0x8] sm:$0xff]  ;;  %v213_v20 = vld [vmem:[%s504_s5 + $0x10] sm:$0xff] }
  0x16   :  { %354 = vmatpush3.bf16.msra.mxu0 %v353_v4  ;;  %v362_v14 = vpack.c.bf16 %v212_v13, %v211_v12  ;;  %v304_v15 = vld [vmem:[%s501_s2] ss:$0 sm:$0xff]  ;;  %v214_v21 = vld [vmem:[%s504_s5 + $0x18] sm:$0xff] }
  0x17   :  { %357 = vmatpush3.bf16.msra.mxu1 %v356_v7  ;;  %361 = vmatprep.subr.bf16.mxu0 %v402_v0  ;;  %v365_v22 = vpack.c.bf16 %v214_v21, %v213_v20  ;;  %v306_v23 = vld [vmem:[%s503_s4] ss:$0 sm:$0xff] }
  0x18   :  { %358 = vmatprep.subr.bf16.mxu1 %v402_v0  ;;  %v308_v28 = vld [vmem:[%s505_s6] ss:$0 sm:$0xff] }
  0x19   :  { %328 = vmatmul.mubr.msk.f32.vlgmr.msra.gmra.mrb[0].mxu0 %vm50_vm1, %v40_v8 }
  0x1a   :  { %349 = vmatprep.mubr.msk.f32.mxu0 %vm403_vm0, %v404_v1  ;;  %363 = vmatpush3.bf16.msra.mxu0 %v362_v14 }
  0x1b   :  { %360 = vmatpush3.bf16.msra.mxu1 %v359_v11  ;;  %364 = vmatprep.subr.bf16.mxu0 %v402_v0 }
  0x1e   :  { %366 = vmatpush3.bf16.msra.mxu0 %v365_v22 }
  0xec   :  { %v120_v16 = vpop.f32.mrb[0].mxu0 }
  0xed   :  { %v121_v17 = vadd.f32 %v304_v15, %v120_v16  ;;  %v329_v18 = vpop.f32.mrb[1].mxu0 }
  0xef   :  { %v124_v19 = vmax.f32 %v121_v17, 0.0 }
  0xf1   :  { %339 = vmatmul.mubr.msk.f32.vlgmr.msra.gmra.mrb[0].mxu1 %vm136_vm2, %v124_v19 }
 0x1c4   :  { %v206_v24 = vpop.f32.mrb[0].mxu1 }
 0x1c5   :  { %v207_v25 = vadd.f32 %v306_v23, %v206_v24  ;;  %v340_v26 = vpop.f32.mrb[1].mxu1 }
 0x1c7   :  { %v210_v27 = vmax.f32 %v207_v25, 0.0 }
 0x1c9   :  { %350 = vmatmul.mubr.msk.f32.vlgmr.msra.gmra.mrb[2].mxu0 %vm136_vm2, %v210_v27 }
 0x29c   :  { %v291_v29 = vpop.f32.mrb[2].mxu0 }
 0x29d   :  { %v292_v30 = vadd.f32 %v308_v28, %v291_v29  ;;  %v351_v31 = vpop.f32.mrb[3].mxu0 }
 0x29f   :  { %373 = vtanh.f32 %v292_v30 }
 0x2a9   :  { %v374_v32 = vpop.eup %373 }
 0x2aa   :  { %v296_v33 = vmul.f32 2.0, %v374_v32 }
 0x2ac   :  { %298 = vst.msk [vmem:[%s506_s7] sm:$0xff] %vm297_vm3, %v296_v33 }
 0x2ad   :  { %303 = vsyncpa [#allocation3], 1 }

</bundles_post_ra>
